<compile_context>
chip_gen: v6e
topology: v6e:2x2x1
jax: 0.10.0
libtpu: 0.0.40
codegen_flags: <defaults>
</compile_context>

<pallas_src>
import numpy as np
import jax
import jax.numpy as jnp
from jax.experimental import pallas as pl
from jax.experimental.pallas import tpu as pltpu


# ----------------------------- config ("args") -----------------------------
NUM_LATENT = 3
NUM_TRASH = 1
DEPTH = 2
N_CELLS = 1

N_QUBITS = NUM_LATENT + NUM_TRASH            # 4
DIM = 2 ** N_QUBITS                          # 16 (statevector dimension)
N_WEIGHTS = (4 * N_QUBITS - 2) * DEPTH * 4   # weights per cell (as in __init__)
TOTAL_WEIGHTS = N_WEIGHTS * N_CELLS
N_LAYERS = DEPTH * N_CELLS

B = 512    # documents per call (single block, lane-dense output)
F = 32     # raw features per document
EPS = 1e-6


# ------------------------- circuit construction glue -----------------------
def _cnot_ring(n_qubits: int) -> np.ndarray:
    """Full-statevector matrix of CNOT(q, q+1 mod n) for all q. Qubit 0 = MSB."""
    d = 2 ** n_qubits
    u = np.eye(d, dtype=np.float32)
    for q in range(n_qubits):
        t = (q + 1) % n_qubits
        p = np.zeros((d, d), dtype=np.float32)
        for i in range(d):
            if (i >> (n_qubits - 1 - q)) & 1:
                j = i ^ (1 << (n_qubits - 1 - t))
            else:
                j = i
            p[j, i] = 1.0
        u = p @ u
    return u


def _ry(theta):
    c = jnp.cos(theta / 2.0)
    s = jnp.sin(theta / 2.0)
    return jnp.stack([jnp.stack([c, -s]), jnp.stack([s, c])])


def build_layer_unitaries(model_weights: jnp.ndarray) -> jnp.ndarray:
    """Build [L, D, D] transposed layer unitaries from the flat weight vector."""
    cnot = jnp.asarray(_cnot_ring(N_QUBITS))
    chunk = (4 * N_QUBITS - 2) * 4   # weights consumed per layer in the original circuit
    u_t_layers = []
    for l in range(N_LAYERS):
        angles = model_weights[l * chunk: l * chunk + N_QUBITS]
        rot = _ry(angles[0])
        for q in range(1, N_QUBITS):
            rot = jnp.kron(rot, _ry(angles[q]))
        u = cnot @ rot                       # layer unitary acting on column vectors
        u_t_layers.append(u.T)               # pre-transpose for row-vector states
    return jnp.stack(u_t_layers).astype(jnp.float32)


def build_effective_encoder(w_enc: jnp.ndarray, u_t: jnp.ndarray) -> jnp.ndarray:
    """Fold encoder + all layer unitaries into one [F, D] matrix (host-side)."""
    m = w_enc
    for l in range(u_t.shape[0]):
        m = m @ u_t[l]
    return m.astype(jnp.float32)


def z0_diag() -> np.ndarray:
    return np.array(
        [1.0 if ((i >> (N_QUBITS - 1)) & 1) == 0 else -1.0 for i in range(DIM)],
        dtype=np.float32)


def build_zo() -> jnp.ndarray:
    """[2, D]: row 0 = Z_0 diagonal, row 1 = ones (norm). One matmul -> num & den."""
    return jnp.asarray(np.stack([z0_diag(), np.ones(DIM, dtype=np.float32)]))


# ------------------------------ Pallas kernel ------------------------------
def classifier_kernel(xt_ref, wt_ref, zo_ref, out_ref):
    # Batch-in-lanes state: y_t = W_eff^T @ x^T -> [D, B] (lane axis = documents).
    y = jnp.dot(wt_ref[...], xt_ref[...],
                preferred_element_type=jnp.float32)              # [D, B]
    sq = y * y                                                   # [D, B]

    # One small MXU matmul produces both the <Z_0> numerator and the squared
    # norm (deferred normalization; layer unitaries are orthogonal).
    nd = jnp.dot(zo_ref[...], sq,
                 preferred_element_type=jnp.float32)             # [2, B]
    num = nd[0:1, :]                                             # [1, B]
    den = nd[1:2, :] + EPS                                       # [1, B]

    # Lane-dense, unmasked store; reciprocal runs on the EUP slot.
    out_ref[...] = (num * pl.reciprocal(den, approx=True)).astype(jnp.float32)


def classifier_forward(features, w_eff, zo):
    # Wrapper-side layout plumbing (tiny arrays): batch-in-lanes inputs.
    x_t = jnp.transpose(features)            # [F, B]
    w_t = jnp.transpose(w_eff)               # [D, F]
    out = pl.pallas_call(
        classifier_kernel,
        out_shape=jax.ShapeDtypeStruct((1, B), jnp.float32),
        grid_spec=pltpu.PrefetchScalarGridSpec(
            num_scalar_prefetch=0,
            grid=(1,),                                     # single step: no per-step overhead
            in_specs=[
                pl.BlockSpec((F, B), lambda i: (0, 0)),    # features^T, full block
                pl.BlockSpec((DIM, F), lambda i: (0, 0)),  # W_eff^T, resident
                pl.BlockSpec((2, DIM), lambda i: (0, 0)),  # [z_diag; ones]
            ],
            out_specs=pl.BlockSpec((1, B), lambda i: (0, 0)),   # lane-dense store
        ),
    )(x_t, w_t, zo)
    return out.reshape(B)   # predictions, float32, one per document


# ------------------------------ reference (JAX) -----------------------------
def classifier_reference(features, w_enc, u_t, zdiag):
    # Full (unfolded) original computation: encode, normalize, apply each
    # layer unitary, measure <Z_0>.
    amps = features @ w_enc
    state = amps / jnp.sqrt(jnp.sum(amps * amps, axis=-1, keepdims=True) + EPS)
    for l in range(u_t.shape[0]):
        state = state @ u_t[l]
    return jnp.sum(state * state * zdiag.reshape(1, DIM), axis=-1).astype(jnp.float32)


# ----------------------------------- main -----------------------------------
if __name__ == "__main__":
    key = jax.random.PRNGKey(0)
    k_feat, k_w, k_enc = jax.random.split(key, 3)

    # deterministic "documents" and parameters
    features = jax.random.normal(k_feat, (B, F), dtype=jnp.float32)
    # mirrors nn.Parameter(0.1 * torch.rand(n_weights * n_cells))
    model_weights = 0.1 * jax.random.uniform(k_w, (TOTAL_WEIGHTS,), dtype=jnp.float32)
    # synthetic encoder: a fixed linear map features -> amplitudes
    w_enc = jax.random.normal(k_enc, (F, DIM), dtype=jnp.float32) / jnp.sqrt(F)

    u_t = build_layer_unitaries(model_weights)
    w_eff = build_effective_encoder(w_enc, u_t)   # host-side algebraic fold
    zo = build_zo()

    preds = classifier_forward(features, w_eff, zo)
    preds = jax.block_until_ready(preds)

    ref = classifier_reference(features, w_enc, u_t, jnp.asarray(z0_diag()))
    assert preds.shape == (B,) and preds.dtype == jnp.float32
    assert np.allclose(np.asarray(preds), np.asarray(ref), atol=1e-2), "mismatch vs reference"

    print("KERNEL_OK")
</pallas_src>

<mosaic_0001>
module attributes {stable_mosaic.version = 11 : i64} {
  func.func @classifier_kernel(%arg0: i32, %arg1: memref<32x512xf32, #tpu.memory_space<vmem>>, %arg2: memref<16x32xf32, #tpu.memory_space<vmem>>, %arg3: memref<2x16xf32, #tpu.memory_space<vmem>>, %arg4: memref<1x512xf32, #tpu.memory_space<vmem>>) attributes {dimension_semantics = [#tpu.dimension_semantics<arbitrary>], iteration_bounds = array<i64: 1>, scalar_prefetch = 0 : i64, scratch_operands = 0 : i64, tpu.core_type = #tpu.core_type<tc>, window_params = [{pipeline_mode = #tpu.pipeline_mode<synchronous>, transform_indices = @transform_0, window_bounds = array<i64: 32, 512>}, {pipeline_mode = #tpu.pipeline_mode<synchronous>, transform_indices = @transform_1, window_bounds = array<i64: 16, 32>}, {pipeline_mode = #tpu.pipeline_mode<synchronous>, transform_indices = @transform_2, window_bounds = array<i64: 2, 16>}, {pipeline_mode = #tpu.pipeline_mode<synchronous>, transform_indices = @transform_3, window_bounds = array<i64: 1, 512>}]} {
    %c0 = arith.constant 0 : index
    %c0_0 = arith.constant 0 : index
    %0 = vector.load %arg2[%c0, %c0_0] : memref<16x32xf32, #tpu.memory_space<vmem>>, vector<16x32xf32>
    %c0_1 = arith.constant 0 : index
    %c0_2 = arith.constant 0 : index
    %1 = vector.load %arg1[%c0_1, %c0_2] : memref<32x512xf32, #tpu.memory_space<vmem>>, vector<32x512xf32>
    %cst = arith.constant dense<0.000000e+00> : vector<16x512xf32>
    %2 = tpu.matmul %0, %1, %cst {dimension_numbers = #tpu.dot_dimension_numbers<[1], [0], [0], [1], [0, 0, 1, 1], [], []>} : vector<16x32xf32>, vector<32x512xf32>, vector<16x512xf32> -> vector<16x512xf32>
    %3 = arith.mulf %2, %2 : vector<16x512xf32>
    %c0_3 = arith.constant 0 : index
    %c0_4 = arith.constant 0 : index
    %4 = vector.load %arg3[%c0_3, %c0_4] : memref<2x16xf32, #tpu.memory_space<vmem>>, vector<2x16xf32>
    %cst_5 = arith.constant dense<0.000000e+00> : vector<2x512xf32>
    %5 = tpu.matmul %4, %3, %cst_5 {dimension_numbers = #tpu.dot_dimension_numbers<[1], [0], [0], [1], [0, 0, 1, 1], [], []>} : vector<2x16xf32>, vector<16x512xf32>, vector<2x512xf32> -> vector<2x512xf32>
    %6 = vector.extract_strided_slice %5 {offsets = [0, 0], sizes = [1, 512], strides = [1, 1]} : vector<2x512xf32> to vector<1x512xf32>
    %7 = vector.extract_strided_slice %5 {offsets = [1, 0], sizes = [1, 512], strides = [1, 1]} : vector<2x512xf32> to vector<1x512xf32>
    %cst_6 = arith.constant 9.99999997E-7 : f32
    %8 = vector.broadcast %cst_6 : f32 to vector<1x512xf32>
    %9 = arith.addf %7, %8 : vector<1x512xf32>
    %10 = tpu.reciprocal %9 {approx = true} : vector<1x512xf32> -> vector<1x512xf32>
    %11 = arith.mulf %6, %10 : vector<1x512xf32>
    %c0_7 = arith.constant 0 : index
    %c0_8 = arith.constant 0 : index
    %12 = vector.load %arg4[%c0_7, %c0_8] : memref<1x512xf32, #tpu.memory_space<vmem>>, vector<1x512xf32>
    tpu.vector_store %arg4[%c0_7, %c0_8], %11 {strides = array<i32>} : memref<1x512xf32, #tpu.memory_space<vmem>>, vector<1x512xf32>,
    return
  }
  func.func @transform_0(%arg0: i32) -> (i32, i32) {
    %c0_i32 = arith.constant 0 : i32
    %c0_i32_0 = arith.constant 0 : i32
    %c0_i32_1 = arith.constant 0 : i32
    return %c0_i32, %c0_i32_0 : i32, i32
  }
  func.func @transform_1(%arg0: i32) -> (i32, i32) {
    %c0_i32 = arith.constant 0 : i32
    %c0_i32_0 = arith.constant 0 : i32
    %c0_i32_1 = arith.constant 0 : i32
    return %c0_i32, %c0_i32_0 : i32, i32
  }
  func.func @transform_2(%arg0: i32) -> (i32, i32) {
    %c0_i32 = arith.constant 0 : i32
    %c0_i32_0 = arith.constant 0 : i32
    %c0_i32_1 = arith.constant 0 : i32
    return %c0_i32, %c0_i32_0 : i32, i32
  }
  func.func @transform_3(%arg0: i32) -> (i32, i32) {
    %c0_i32 = arith.constant 0 : i32
    %c0_i32_0 = arith.constant 0 : i32
    %c0_i32_1 = arith.constant 0 : i32
    return %c0_i32, %c0_i32_0 : i32, i32
  }
}

</mosaic_0001>

<bundles_post_ra>
// kernel: tpu_custom_call.1
= control target key start
LH: loop header
LB: loop body
LE: loop exit
PB: predicated region body
PF: predicated region fallthrough
CT: control target
= control target key end

     0   :  { %8 = vsyncpa [#allocation3], 0  ;;  %s581_s0 = inlined_call_operand.hbm [shape: f32[32,512], index: 0, kind: input, shape index: {}]   ;;  %s582_s1 = inlined_call_operand.hbm [shape: f32[16,32], index: 1, kind: input, shape index: {}]   ;;  %s583_s2 = inlined_call_operand.vmem [shape: f32[2,16], index: 2, kind: input, shape index: {}]   ;;  %s584_s3 = inlined_call_operand.hbm [shape: f32[1,512], index: 3, kind: output, shape index: {}]  }
   0x1   :  { %9 = vsyncpa [#allocation6], 0 }
   0x2   :  { %10 = vsyncpa [#allocation4], 0  ;;  %s540_s12 = smov [#allocation2]  }
   0x3   :  { %s16_s13 = sshll.u32 %s540_s12, 4  ;;  %s17_s13 = int_to_ptr.vmem [resolvable:$true] %s16_s13 }
   0x4   :  { %s482_s14 = scalar_lea.vmem %s17_s13, 2048  ;;  %p487_p1 = scmp.lt.s32.totalorder %s17_s13, %s17_s13 }
   0x5   :  { %p483_p0 = scmp.ne.s32.totalorder %s17_s13, %s482_s14  ;;  %p488_p2 = scmp.lt.s32.totalorder %s482_s14, %s482_s14 }
   0x7   :  { %p489_p3 = por %p488_p2, %p487_p1 }
   0x9   :  { %p490_p4 = pnand %p489_p3, %p483_p0 }
   0xb   :  { %493 = shalt.err (!%p490_p4)
}
   0xc   :  { %s541_s15 = smov 512   ;;  %s542_s16 = smov 32  }
   0xd   :  { %22 = dma.hbm_to_vmem [thread:$0]  %s581_s0, 2048, %s17_s13, [#allocation3], %s541_s15, %s541_s15, %s542_s16  }
   0xe   :  { %s543_s19 = smov [#allocation5]  }
   0xf   :  { %s28_s20 = sshll.u32 %s543_s19, 4  ;;  %s29_s20 = int_to_ptr.vmem [resolvable:$true] %s28_s20 }
  0x10   :  { %s502_s21 = scalar_lea.vmem %s29_s20, 256  ;;  %p507_p6 = scmp.lt.s32.totalorder %s29_s20, %s29_s20 }
  0x11   :  { %p503_p5 = scmp.ne.s32.totalorder %s29_s20, %s502_s21  ;;  %p508_p7 = scmp.lt.s32.totalorder %s502_s21, %s502_s21 }
  0x13   :  { %p509_p8 = por %p508_p7, %p507_p6 }
  0x15   :  { %p510_p9 = pnand %p509_p8, %p503_p5 }
  0x17   :  { %513 = shalt.err (!%p510_p9)
}
  0x18   :  { %s544_s22 = smov 128   ;;  %s545_s23 = smov 8  }
  0x19   :  { %34 = dma.hbm_to_vmem [thread:$0]  %s582_s1, 256, %s29_s20, [#allocation6], %s544_s22, %s544_s22, %s545_s23  }
  0x1a   :  { %534 = dma.done.wait [#allocation3], 2048  }
  0x1b   :  { %535 = vsyncadd [#allocation3], 4294965248 }
  0x1c   :  { %536 = dma.done.wait [#allocation6], 256  }
  0x1d   :  { %537 = vsyncadd [#allocation6], 4294967040  ;;  %v546_v0 = vmov 0.0   ;;  %v58_v1 = vld [vmem:[#allocation2 + $0x68] sm:$0xff]  ;;  %v60_v2 = vld [vmem:[#allocation2 + $0x78] sm:$0xff]  ;;  %vm61_vm0 = vcmask 261120   ;;  %v410_v46 = vlaneseq }
  0x1e   :  { %132 = vmatprep.mubr.f32.mxu0 %v546_v0  ;;  %209 = vmatprep.mubr.f32.mxu1 %v546_v0  ;;  %v57_v3 = vld [vmem:[#allocation2 + $0x60] sm:$0xff]  ;;  %v59_v4 = vld [vmem:[#allocation2 + $0x70] sm:$0xff]  ;;  %v54_v5 = vld [vmem:[#allocation2 + $0x48] sm:$0xff]  ;;  %vm231_vm1 = vcmask 130048   ;;  %v547_v44 = vmov 1966171168  }
  0x1f   :  { %92 = vmatprep.subr.mxu0 %v58_v1  ;;  %169 = vmatprep.subr.mxu1 %v60_v2  ;;  %v56_v6 = vld [vmem:[#allocation2 + $0x58] sm:$0xff]  ;;  %v53_v7 = vld [vmem:[#allocation2 + $0x40] sm:$0xff]  ;;  %v55_v8 = vld [vmem:[#allocation2 + $0x50] sm:$0xff]  ;;  %v408_v45 = vunpack.c.l.s4 %v547_v44  ;;  %v411_v51 = vshrl.u32 %v410_v46, 7  ;;  %vm432_vm2 = vcmp.lt.s32.totalorder %v410_v46, 512 }
  0x20   :  { %93 = vmatpush1.msra.mxu0 %v57_v3  ;;  %170 = vmatpush1.msra.mxu1 %v59_v4  ;;  %v50_v9 = vld [vmem:[#allocation2 + $0x28] sm:$0xff]  ;;  %v52_v10 = vld [vmem:[#allocation2 + $0x38] sm:$0xff]  ;;  %v49_v11 = vld [vmem:[#allocation2 + $0x20] sm:$0xff] }
  0x21   :  { %94 = vmatprep.subr.mxu0 %v54_v5  ;;  %171 = vmatprep.subr.mxu1 %v56_v6  ;;  %v51_v12 = vld [vmem:[#allocation2 + $0x30] sm:$0xff]  ;;  %v46_v13 = vld [vmem:[#allocation2 + $0x8] sm:$0xff]  ;;  %v48_v14 = vld [vmem:[#allocation2 + $0x18] sm:$0xff]  ;;  %v409_v50 = vunpack.c.0.s8 %v408_v45 }
  0x22   :  { %95 = vmatpush1.msra.mxu0 %v53_v7  ;;  %172 = vmatpush1.msra.mxu1 %v55_v8  ;;  %v45_v15 = vld [vmem:[#allocation2] sm:$0xff]  ;;  %v47_v16 = vld [vmem:[#allocation2 + $0x10] sm:$0xff]  ;;  %v44_v18 = vld [vmem:[#allocation5 + $0x8] sm:$0xff] }
  0x23   :  { %96 = vmatprep.subr.mxu0 %v50_v9  ;;  %173 = vmatprep.subr.mxu1 %v52_v10  ;;  %v43_v17 = vld [vmem:[#allocation5] sm:$0xff]  ;;  %v412_v59 = vsub.s32 %v409_v50, %v411_v51 }
  0x24   :  { %97 = vmatpush1.msra.mxu0 %v49_v11  ;;  %174 = vmatpush1.msra.mxu1 %v51_v12  ;;  %v230_v35 = vld [vmem:[%s583_s2] sm:$0x3]  ;;  %s548_s2 = smov [#allocation7]  }
  0x25   :  { %98 = vmatprep.subr.mxu0 %v46_v13  ;;  %175 = vmatprep.subr.mxu1 %v48_v14  ;;  %s441_s26 = sshll.u32 %s548_s2, 4  ;;  %s442_s26 = int_to_ptr.vmem [resolvable:$true] %s441_s26 }
  0x26   :  { %99 = vmatpush1.msra.mxu0 %v45_v15  ;;  %176 = vmatpush1.msra.mxu1 %v47_v16  ;;  %s514_s27 = scalar_lea.vmem %s442_s26, 64  ;;  %p519_p11 = scmp.lt.s32.totalorder %s442_s26, %s442_s26 }
  0x27   :  { %451 = vmatmul.mubr.msk.f32.vlgmr.msra.gmra.mxu0 %vm61_vm0, %v43_v17  ;;  %453 = vmatmul.mubr.msk.f32.vlgmr.msra.gmra.mxu1 %vm61_vm0, %v43_v17  ;;  %p515_p10 = scmp.ne.s32.totalorder %s442_s26, %s514_s27  ;;  %p520_p12 = scmp.lt.s32.totalorder %s514_s27, %s514_s27 }
  0x28   :  { %138 = vmatprep.mubr.f32.mxu0 %v546_v0  ;;  %215 = vmatprep.mubr.f32.mxu1 %v546_v0 }
  0x29   :  { %p521_p13 = por %p520_p12, %p519_p11 }
  0x2b   :  { %452 = vmatmul.mubr.msk.f32.gmra.mxu0 %vm61_vm0, %v44_v18  ;;  %454 = vmatmul.mubr.msk.f32.gmra.mxu1 %vm61_vm0, %v44_v18  ;;  %p522_p0 = pnand %p521_p13, %p515_p10 }
  0x2c   :  { %299 = vmatprep.mubr.f32.mxu0 %v546_v0  ;;  %370 = vmatprep.mubr.f32.mxu1 %v546_v0 }
  0xe7   :  { %v134_v19 = vpop.f32.mrf.mxu0  ;;  %v211_v20 = vpop.f32.mrf.mxu1 }
  0xe8   :  { %v222_v33 = vmul.f32 %v134_v19, %v134_v19  ;;  %v224_v34 = vmul.f32 %v211_v20, %v211_v20 }
  0xe9   :  { %v136_v21 = vpop.f32.mrf.mxu0  ;;  %v213_v22 = vpop.f32.mrf.mxu1 }
  0xea   :  { %v223_v31 = vmul.f32 %v136_v21, %v136_v21  ;;  %v225_v32 = vmul.f32 %v213_v22, %v213_v22 }
  0xeb   :  { %v140_v23 = vpop.f32.mrf.mxu0  ;;  %v217_v24 = vpop.f32.mrf.mxu1 }
  0xec   :  { %v226_v29 = vmul.f32 %v140_v23, %v140_v23  ;;  %v228_v30 = vmul.f32 %v217_v24, %v217_v24 }
  0xed   :  { %v142_v25 = vpop.f32.mrf.mxu0  ;;  %v219_v26 = vpop.f32.mrf.mxu1 }
  0xee   :  { %v227_v27 = vmul.f32 %v142_v25, %v142_v25  ;;  %v229_v28 = vmul.f32 %v219_v26, %v219_v26 }
  0xf0   :  { %263 = vmatprep.subr.mxu0 %v227_v27  ;;  %334 = vmatprep.subr.mxu1 %v229_v28 }
  0xf1   :  { %264 = vmatpush1.msra.mxu0 %v226_v29  ;;  %335 = vmatpush1.msra.mxu1 %v228_v30 }
  0xf2   :  { %265 = vmatprep.subr.mxu0 %v223_v31  ;;  %336 = vmatprep.subr.mxu1 %v225_v32 }
  0xf3   :  { %266 = vmatpush1.msra.mxu0 %v222_v33  ;;  %337 = vmatpush1.msra.mxu1 %v224_v34 }
  0xf4   :  { %455 = vmatmul.mubr.msk.f32.vlgmr.msra.gmra.mxu0 %vm231_vm1, %v230_v35  ;;  %456 = vmatmul.mubr.msk.f32.vlgmr.msra.gmra.mxu1 %vm231_vm1, %v230_v35 }
 0x1b4   :  { %v301_v36 = vpop.f32.mrf.mxu0  ;;  %v372_v37 = vpop.f32.mrf.mxu1 }
 0x1b5   :  { %v377_v38 = vadd.f32 1e-06, %v301_v36  ;;  %v379_v39 = vadd.f32 1e-06, %v372_v37 }
 0x1b6   :  { %v303_v40 = vpop.f32.mrf.mxu0  ;;  %v374_v41 = vpop.f32.mrf.mxu1 }
 0x1b7   :  { %466 = vrcp.f32 %v377_v38  ;;  %v378_v42 = vadd.f32 1e-06, %v303_v40  ;;  %v380_v43 = vadd.f32 1e-06, %v374_v41 }
 0x1b8   :  { %468 = vrcp.f32 %v379_v39 }
 0x1b9   :  { %470 = vrcp.f32 %v378_v42 }
 0x1ba   :  { %472 = vrcp.f32 %v380_v43 }
 0x1c4   :  { %v467_v47 = vpop.eup %466 }
 0x1c5   :  { %v469_v48 = vpop.eup %468  ;;  %v389_v49 = vrot.slane %v467_v47, 1 }
 0x1c6   :  { %v471_v52 = vpop.eup %470  ;;  %v391_v53 = vrot.slane %v469_v48, 1 }
 0x1c7   :  { %v473_v54 = vpop.eup %472  ;;  %v390_v55 = vrot.slane %v471_v52, 1  ;;  %v397_v57 = vmul.f32 %v389_v49, %v301_v36 }
 0x1c8   :  { %v392_v56 = vrot.slane %v473_v54, 1  ;;  %v399_v60 = vmul.f32 %v391_v53, %v372_v37 }
 0x1c9   :  { %v398_v58 = vmul.f32 %v390_v55, %v303_v40 }
 0x1ca   :  { %v400_v61 = vmul.f32 %v392_v56, %v374_v41 }
 0x1cb   :  { %v405_v62 = vcombine.low %v397_v57, %v398_v58 }
 0x1cc   :  { %v406_v63 = vcombine.low %v399_v60, %v400_v61 }
 0x1cd   :  { %v413_v0 = vrot.slane %v405_v62, %v412_v59 }
 0x1ce   :  { %v420_v1 = vrot.slane %v406_v63, %v412_v59 }
 0x1d0   :  { %v421_v2 = vcombine.low %v413_v0, %v420_v1 }
 0x1d2   :  { %v428_v3 = vrot.slane %v421_v2, %v412_v59 }
 0x1d4   :  { %434 = vst.msk [vmem:[#allocation7] sm:$0xf] %vm432_vm2, %v428_v3 }
 0x1d5   :  { %525 = shalt.err (!%p522_p0)
}
 0x1d6   :  { %444 = dma.vmem_to_hbm [thread:$0]  %s442_s26, 64, %s584_s3, [#allocation4]  }
 0x1d7   :  { %538 = dma.done.wait [#allocation4], 64  }
 0x1d8   :  { %539 = vsyncadd [#allocation4], 4294967232 }
 0x1d9   :  { %448 = vsyncpa [#allocation3], 1 }
 0x1da   :  { %449 = vsyncpa [#allocation6], 1 }
 0x1db   :  { %450 = vsyncpa [#allocation4], 1 }

</bundles_post_ra>
